<compile_context>
chip_gen: v5e
topology: v5e:2x2
jax: 0.10.0
libtpu: 0.0.40
codegen_flags: <defaults>
</compile_context>

<pallas_src>
import jax
import jax.numpy as jnp
from jax.experimental import pallas as pl
from jax.experimental.pallas import tpu as pltpu


_CHUNK = 8  # one f32 sublane tile worth of channels per accumulation step


def _gce_kernel(x_ref, w_ref, b_ref, o_ref):
    # x_ref: (TB, C, TN) VMEM   w_ref: (C, 1) f32 VMEM
    # b_ref: (1,) f32 SMEM      o_ref: (TB, TN) VMEM
    TB, C, TN = x_ref.shape
    acc = jnp.full((TB, TN), b_ref[0], dtype=jnp.float32)
    # Accumulate the channel reduction in sublane-sized chunks so the f32
    # intermediate never exceeds one (TB, 8, TN) slab -> vreg/VMEM pressure
    # stays flat regardless of C even with 16-24 MiB input blocks.
    for lo in range(0, C, _CHUNK):
        hi = min(C, lo + _CHUNK)
        xs = x_ref[:, lo:hi, :].astype(jnp.float32)   # (TB, ch, TN)
        ws = w_ref[lo:hi, :]                          # (ch, 1) f32, broadcasts
        acc = acc + jnp.sum(xs * ws, axis=1)          # VPU mul + XLU sublane reduce
    o_ref[...] = acc.astype(o_ref.dtype)


def _round_up(x, m):
    return ((x + m - 1) // m) * m


def _sublane_pack(itemsize):
    # f32 -> 8 sublanes, bf16 -> 16, int8/fp8 -> 32 (packed layouts).
    return {4: 8, 2: 16, 1: 32}.get(itemsize, 8)


def _vmem_capacity_bytes():
    try:
        return int(pltpu.get_tpu_info().vmem_capacity_bytes)
    except Exception:
        return 64 * 1024 * 1024  # conservative (v7x-class) default


def _choose_tiles(B, C, N, itemsize, budget):
    """Pick (TB, TN) so one laid-out input block fits `budget` bytes."""
    sub = _sublane_pack(itemsize)
    padded_c = _round_up(C, sub)

    def row_bytes(tn):
        # Laid-out footprint of one (1, C, tn) slab: C padded to the sublane
        # pack, tn padded to 128 lanes.
        return padded_c * _round_up(max(tn, 1), 128) * itemsize

    tb_plan = min(B, 8)
    if tb_plan * row_bytes(N) <= budget:
        TN = N                                   # full-N: long contiguous DMA runs
    else:
        TN = (budget // (tb_plan * padded_c * itemsize)) // 128 * 128
        TN = max(128, min(TN, _round_up(N, 128)))

    max_tb = max(1, budget // row_bytes(TN))
    if B <= max_tb:
        TB = B                                   # block dim == full dim is always legal
    elif max_tb >= 8:
        TB = (max_tb // 8) * 8                   # output sublane dim must be 8-aligned
    else:
        TB = 8
    return TB, TN


def _vmem_need_bytes(TB, C, TN, itemsize):
    sub = _sublane_pack(itemsize)
    in_blk = TB * _round_up(C, sub) * _round_up(TN, 128) * itemsize
    out_blk = _round_up(TB, sub) * _round_up(TN, 128) * itemsize
    w_blk = _round_up(C, 8) * 128 * 4
    # double-buffered input + output, resident weight, margin
    return 2 * (in_blk + out_blk) + w_blk + (2 << 20)


def gce_forward(seed_features, weight, bias, end_points=None):
    """Pallas implementation of GCE.forward.

    seed_features: (B, C, N)
    weight:        (1, C)   (Conv1d weight with the k=1 dim squeezed)
    bias:          (1, 1)
    Returns end_points dict with 'graspable_score' of shape (B, 1, N).
    """
    B, C, N = seed_features.shape
    dtype = seed_features.dtype
    itemsize = jnp.dtype(dtype).itemsize

    # Per-generation block budget / scoped-VMEM limit.
    vmem_phys = _vmem_capacity_bytes()
    if vmem_phys <= 80 * 1024 * 1024:            # v7x-class: 64 MiB per core
        block_budget = 16 * 1024 * 1024
        vmem_cap = 56 * 1024 * 1024
    else:                                        # v5e / v6e: 128 MiB
        block_budget = 24 * 1024 * 1024
        vmem_cap = 100 * 1024 * 1024

    TB, TN = _choose_tiles(B, C, N, itemsize, block_budget)

    # Guarantee >= 2 parallel grid steps for big-enough problems so both v7x
    # TensorCores stream and the double-buffered pipeline actually overlaps.
    if pl.cdiv(B, TB) * pl.cdiv(N, TN) < 2:
        if N > 128:
            TN = max(128, _round_up(pl.cdiv(N, 2), 128))
        elif B > 8:
            TB = max(8, _round_up(pl.cdiv(B, 2), 8))

    grid = (pl.cdiv(B, TB), pl.cdiv(N, TN))
    vmem_limit = min(max(_vmem_need_bytes(TB, C, TN, itemsize), 32 << 20), vmem_cap)

    # Weights stay f32 (C*4 bytes; no silent downcast), channels on sublanes.
    w = jnp.reshape(weight, (C, 1)).astype(jnp.float32)
    b = jnp.reshape(bias, (1,)).astype(jnp.float32)     # scalar -> SMEM

    cost = pl.CostEstimate(
        flops=2 * B * C * N,
        transcendentals=0,
        bytes_accessed=(B * C * N + B * N) * itemsize + C * 4 + 4,
    )

    out2d = pl.pallas_call(
        _gce_kernel,
        out_shape=jax.ShapeDtypeStruct((B, N), dtype),
        grid_spec=pl.GridSpec(
            grid=grid,
            in_specs=[
                pl.BlockSpec((TB, C, TN), lambda bi, ni: (bi, 0, ni)),
                pl.BlockSpec((C, 1), lambda bi, ni: (0, 0)),
                pl.BlockSpec(memory_space=pltpu.MemorySpace.SMEM),
            ],
            out_specs=pl.BlockSpec((TB, TN), lambda bi, ni: (bi, ni)),
        ),
        compiler_params=pltpu.CompilerParams(
            dimension_semantics=("parallel", "parallel"),
            vmem_limit_bytes=vmem_limit,
        ),
        cost_estimate=cost,
    )(seed_features, w, b)

    if end_points is None:
        end_points = {}
    end_points["graspable_score"] = out2d.reshape(B, 1, N)
    return end_points


def _reference(seed_features, weight, bias):
    return jnp.einsum("oc,bcn->bon", weight, seed_features) + bias[0, 0]


if __name__ == "__main__":
    # Small shapes consistent with the module: batch=2, feat_channel=4, num_points=16.
    B, C, N = 2, 4, 16
    kx, kw, kb = jax.random.split(jax.random.PRNGKey(0), 3)
    seed_features = jax.random.normal(kx, (B, C, N), dtype=jnp.float32)
    weight = jax.random.normal(kw, (1, C), dtype=jnp.float32) * 0.1  # torch (1, C, 1) squeezed
    bias = jax.random.normal(kb, (1, 1), dtype=jnp.float32) * 0.1

    end_points = gce_forward(seed_features, weight, bias, end_points={})
    out = jax.block_until_ready(end_points["graspable_score"])
    ref = _reference(seed_features, weight, bias)
    assert out.shape == (B, 1, N)
    assert jnp.allclose(out, ref, atol=1e-5, rtol=1e-5)

    # Ragged multi-block path: partial edge block along N, no wrapper padding.
    B2, C2, N2 = 10, 32, 1000
    kx2, kw2, kb2 = jax.random.split(jax.random.PRNGKey(1), 3)
    sf2 = jax.random.normal(kx2, (B2, C2, N2), dtype=jnp.float32)
    w2 = jax.random.normal(kw2, (1, C2), dtype=jnp.float32) * 0.1
    b2 = jax.random.normal(kb2, (1, 1), dtype=jnp.float32) * 0.1
    out2 = jax.block_until_ready(
        gce_forward(sf2, w2, b2, end_points={})["graspable_score"]
    )
    ref2 = _reference(sf2, w2, b2)
    assert out2.shape == (B2, 1, N2)
    assert jnp.allclose(out2, ref2, atol=1e-4, rtol=1e-4)

    print("KERNEL_OK")
</pallas_src>

<mosaic_0001>
module attributes {stable_mosaic.version = 11 : i64} {
  func.func @_gce_kernel(%arg0: i32, %arg1: i32, %arg2: memref<2x4x16xf32, #tpu.memory_space<vmem>>, %arg3: memref<4x1xf32, #tpu.memory_space<vmem>>, %arg4: memref<1xf32, #tpu.memory_space<smem>>, %arg5: memref<2x16xf32, #tpu.memory_space<vmem>>) attributes {dimension_semantics = [#tpu.dimension_semantics<parallel>, #tpu.dimension_semantics<parallel>], iteration_bounds = array<i64: 1, 1>, scalar_prefetch = 0 : i64, scratch_operands = 0 : i64, tpu.core_type = #tpu.core_type<tc>, window_params = [{transform_indices = @transform_0, window_bounds = array<i64: 2, 4, 16>}, {pipeline_mode = #tpu.pipeline_mode<synchronous>, transform_indices = @transform_1, window_bounds = array<i64: 4, 1>}, {transform_indices = @transform_2, window_bounds = array<i64: 1>}, {transform_indices = @transform_3, window_bounds = array<i64: 2, 16>}]} {
    %c0 = arith.constant 0 : index
    %0 = memref.load %arg4[%c0] : memref<1xf32, #tpu.memory_space<smem>>
    %1 = vector.broadcast %0 : f32 to vector<2x16xf32>
    %c0_0 = arith.constant 0 : index
    %c0_1 = arith.constant 0 : index
    %c0_2 = arith.constant 0 : index
    %2 = vector.load %arg2[%c0_0, %c0_1, %c0_2] : memref<2x4x16xf32, #tpu.memory_space<vmem>>, vector<2x4x16xf32>
    %c0_3 = arith.constant 0 : index
    %c0_4 = arith.constant 0 : index
    %3 = vector.load %arg3[%c0_3, %c0_4] : memref<4x1xf32, #tpu.memory_space<vmem>>, vector<4x1xf32>
    %4 = vector.shape_cast %3 : vector<4x1xf32> to vector<1x4x1xf32>
    %5 = vector.broadcast %4 : vector<1x4x1xf32> to vector<2x4x16xf32>
    %6 = arith.mulf %2, %5 : vector<2x4x16xf32>
    %cst = arith.constant dense<0.000000e+00> : vector<2x16xf32>
    %7 = vector.multi_reduction <add>, %6, %cst [1] : vector<2x4x16xf32> to vector<2x16xf32>
    %8 = arith.addf %1, %7 : vector<2x16xf32>
    %c0_5 = arith.constant 0 : index
    %c0_6 = arith.constant 0 : index
    %9 = vector.load %arg5[%c0_5, %c0_6] : memref<2x16xf32, #tpu.memory_space<vmem>>, vector<2x16xf32>
    tpu.vector_store %arg5[%c0_5, %c0_6], %8 {strides = array<i32>} : memref<2x16xf32, #tpu.memory_space<vmem>>, vector<2x16xf32>,
    return
  }
  func.func @transform_0(%arg0: i32, %arg1: i32) -> (i32, i32, i32) {
    %c0_i32 = arith.constant 0 : i32
    %c0_i32_0 = arith.constant 0 : i32
    return %arg0, %c0_i32, %arg1 : i32, i32, i32
  }
  func.func @transform_1(%arg0: i32, %arg1: i32) -> (i32, i32) {
    %c0_i32 = arith.constant 0 : i32
    %c0_i32_0 = arith.constant 0 : i32
    %c0_i32_1 = arith.constant 0 : i32
    return %c0_i32, %c0_i32_0 : i32, i32
  }
  func.func @transform_2(%arg0: i32, %arg1: i32) -> i32 {
    %c0_i32 = arith.constant 0 : i32
    %c0_i32_0 = arith.constant 0 : i32
    return %c0_i32 : i32
  }
  func.func @transform_3(%arg0: i32, %arg1: i32) -> (i32, i32) {
    %c0_i32 = arith.constant 0 : i32
    return %arg0, %arg1 : i32, i32
  }
}

</mosaic_0001>

<bundles_post_ra>
// kernel: tpu_custom_call.1
= control target key start
LH: loop header
LB: loop body
LE: loop exit
PB: predicated region body
PF: predicated region fallthrough
CT: control target
= control target key end

     0   :  { %9 = vsyncpa [#allocation4], 0  ;;  %s180_s0 = inlined_call_operand.hbm [shape: f32[2,4,16], index: 0, kind: input, shape index: {}]   ;;  %s181_s1 = inlined_call_operand.vmem [shape: f32[4,1], index: 1, kind: input, shape index: {}]   ;;  %s182_s2 = inlined_call_operand.<no memory space> [shape: f32[1], index: 2, kind: input, shape index: {}]   ;;  %s183_s3 = inlined_call_operand.hbm [shape: f32[2,16], index: 3, kind: output, shape index: {}]  }
   0x1   :  { %10 = vsyncpa [#allocation5], 0  ;;  %s15_s14 = sshll.u32 %s180_s0, 4  ;;  %s143_s15 = smov [#allocation3]   ;;  %s16_s14 = int_to_ptr.hbm [resolvable:$true] %s15_s14 }
   0x2   :  { %s17_s16 = sshll.u32 %s143_s15, 4  ;;  %s144_s17 = smov 64   ;;  %s18_s16 = int_to_ptr.vmem [resolvable:$true] %s17_s16 }
   0x3   :  { %s145_s18 = smov 4  }
   0x4   :  { %23 = dma.hbm_to_vmem [thread:$0]  %s16_s14, 128, %s18_s16, [#allocation4], %s144_s17, %s144_s17, %s145_s18  }
   0x5   :  { %139 = dma.done.wait [#allocation4], 128  }
   0x6   :  { %140 = vsyncadd [#allocation4], 4294967168  ;;  %v146_v0 = vmov 0   ;;  %v36_v1 = vld [vmem:[%s181_s1] sm:$0xf]  ;;  %vm44_vm0 = vcmask 125952   ;;  %v33_v19 = vstv %s182_s2 }
   0x7   :  { %90 = vset.pattern.permute.xlu0 %v146_v0  ;;  %v34_v2 = vld [vmem:[#allocation3] sm:$0xf]  ;;  %v35_v3 = vld [vmem:[#allocation3 + $0x4] sm:$0xf]  ;;  %s147_s21 = smov [#allocation6]   ;;  %s75_s25 = sshll.u32 %s183_s3, 4  ;;  %s76_s25 = int_to_ptr.hbm [resolvable:$true] %s75_s25 }
   0x8   :  { %39 = vperm.xlu0 %90, %v36_v1   ;;  %s73_s22 = sshll.u32 %s147_s21, 4  ;;  %vm63_vm1 = vcmask 1041409   ;;  %vm66_vm2 = vcmask 123904   ;;  %s74_s22 = int_to_ptr.vmem [resolvable:$true] %s73_s22 }
  0x7a   :  { %v40_v4 = vpop.permute.xlu0 %39 }
  0x7b   :  { %v42_v5 = vmul.f32 %v40_v4, %v34_v2  ;;  %v43_v6 = vmul.f32 %v40_v4, %v35_v3 }
  0x7d   :  { %v45_v7 = vsel %vm44_vm0, %v42_v5, 0.0  ;;  %v52_v8 = vsel %vm44_vm0, %v43_v6, 0.0 }
  0x7e   :  { %v46_v9 = vrot.slane %v45_v7, 4  ;;  %v53_v10 = vrot.slane %v52_v8, 4 }
  0x80   :  { %v47_v11 = vadd.f32 %v46_v9, %v45_v7  ;;  %v54_v12 = vadd.f32 %v53_v10, %v52_v8 }
  0x82   :  { %v48_v13 = vrot.slane %v47_v11, 2  ;;  %v55_v14 = vrot.slane %v54_v12, 2 }
  0x84   :  { %v49_v15 = vadd.f32 %v48_v13, %v47_v11  ;;  %v56_v16 = vadd.f32 %v55_v14, %v54_v12 }
  0x86   :  { %v50_v17 = vrot.slane %v49_v15, 1  ;;  %v57_v18 = vrot.slane %v56_v16, 1 }
  0x88   :  { %v51_v20 = vadd.f32 %v50_v17, %v49_v15  ;;  %v58_v21 = vadd.f32 %v57_v18, %v56_v16 }
  0x8a   :  { %v59_v22 = vadd.f32 %v51_v20, %v33_v19  ;;  %v60_v23 = vadd.f32 %v58_v21, %v33_v19 }
  0x8c   :  { %v64_v24 = vsel %vm63_vm1, %v60_v23, %v59_v22 }
  0x8d   :  { %67 = vst.msk [vmem:[#allocation6] sm:$0x3] %vm66_vm2, %v64_v24 }
  0x8e   :  { %78 = dma.vmem_to_hbm [thread:$0]  %s74_s22, 32, %s76_s25, [#allocation5]  }
  0x8f   :  { %141 = dma.done.wait [#allocation5], 32  }
  0x90   :  { %142 = vsyncadd [#allocation5], 4294967264 }
  0x91   :  { %83 = vsyncpa [#allocation4], 1 }
  0x92   :  { %84 = vsyncpa [#allocation5], 1 }

</bundles_post_ra>
